<compile_context>
chip_gen: v5e
topology: v5e:2x2
jax: 0.10.0
libtpu: 0.0.40
codegen_flags: <defaults>
</compile_context>

<pallas_src>
import jax
import jax.numpy as jnp
from jax import lax
from jax.experimental import pallas as pl
from jax.experimental.pallas import tpu as pltpu


def _attention_pooler_kernel(x_ref, w1_ref, b1_ref, w2t_ref, b2_ref,
                             pooled_ref, attn_ref):
    bblk, T, D = x_ref.shape
    H = w2t_ref.shape[0]
    xd = x_ref.dtype

    x = x_ref[...]                                   # (bblk, T, D), native dtype
    x2 = x.reshape(bblk * T, D)                      # merge batch rows -> tall MXU LHS
                                                     # (copy-free: D unchanged, T % 8 == 0)

    # h = tanh(x @ W1 + b1); MXU fed native dtype, f32 accumulation.
    acc = (jnp.dot(x2, w1_ref[...], preferred_element_type=jnp.float32)
           + b1_ref[...].astype(jnp.float32))        # (bblk*T, D) f32
    if xd == jnp.bfloat16:
        # bf16 EUP/VPU path (v6e/v7x): tanh in bf16, no separate cast pass.
        h = jnp.tanh(acc.astype(jnp.bfloat16))
    else:
        h = jnp.tanh(acc).astype(xd)                 # f32 path (v5e / f32 inputs)

    h3 = h.reshape(bblk, T, D)                       # split major dims only -> copy-free

    # Scores directly in the (bblk, H, T) output layout: batched matmul contracting D,
    # with W2^T broadcast over the batch block.  Never materialises a lane-sparse (T, H)
    # tile and needs no transpose; softmax reductions below are lane-dense (axis=-1).
    w2b = jnp.broadcast_to(w2t_ref[...].astype(xd), (bblk, H, D))
    scores = lax.dot_general(
        w2b, h3,
        dimension_numbers=(((2,), (2,)), ((0,), (0,))),
        preferred_element_type=jnp.float32)          # (bblk, H, T) f32
    scores = scores + b2_ref[...].astype(jnp.float32)    # b2 is (H, 1), broadcasts

    # Softmax over T, vectorized over the whole block.
    m = jnp.max(scores, axis=-1, keepdims=True)
    e = jnp.exp(scores - m)
    s = jnp.sum(e, axis=-1, keepdims=True)
    r = pl.reciprocal(s, approx=True)                # EUP slot
    r = r * (2.0 - s * r)                            # one Newton step -> full f32 precision
    attn = e * r                                     # (bblk, H, T) f32, rows sum to 1

    attn_ref[...] = attn.astype(attn_ref.dtype)      # single dense store

    # pooled = attn @ x for the whole block: one batched matmul ('bht,btd->bhd').
    pooled = lax.dot_general(
        attn.astype(xd), x,
        dimension_numbers=(((2,), (1,)), ((0,), (0,))),
        preferred_element_type=jnp.float32)          # (bblk, H, D) f32
    pooled_ref[...] = pooled.astype(pooled_ref.dtype)


def _round_up(v, m):
    return ((v + m - 1) // m) * m


def _vmem_bytes_est(bblk, T, D, H, x_dtype, w_dtype, out_dtype):
    """Single-counted VMEM footprint estimate (padded to (8,128) tiles)."""
    isz = jnp.dtype(x_dtype).itemsize
    wsz = jnp.dtype(w_dtype).itemsize
    osz = jnp.dtype(out_dtype).itemsize
    Tp8, Tp128 = _round_up(T, 8), _round_up(T, 128)
    Dp = _round_up(D, 128)
    Hp = _round_up(H, 8)

    x_blk = bblk * Tp8 * Dp * isz
    out_blk = bblk * Hp * Dp * osz + bblk * Hp * Tp128 * osz
    weights = (_round_up(D, 8) * Dp + 8 * Dp + Hp * Dp + Hp * 128) * wsz
    interm = (bblk * Tp8 * Dp * 4          # f32 x@W1 accumulator
              + bblk * Tp8 * Dp * isz      # h in native dtype
              + bblk * Hp * Dp * isz       # broadcast W2^T
              + 2 * bblk * Hp * Tp128 * 4  # scores + attn (f32)
              + bblk * Hp * Dp * 4)        # pooled f32 accumulator
    # Pipelined x / outputs and the (constant) weights are double-buffered by default;
    # intermediates are single-counted.  (No extra 2x on top -- previous bug.)
    return 2 * (x_blk + out_blk) + 2 * weights + interm


def _vmem_capacity_bytes():
    try:
        cap = getattr(pltpu.get_tpu_info(), "vmem_capacity_bytes", None)
        if cap:
            return int(cap)
    except Exception:
        pass
    return 64 * 1024 * 1024          # conservative fallback: v7x per-TensorCore VMEM


def _pick_batch_block(B, T, D, H, x_dtype, w_dtype, out_dtype,
                      vmem_budget_bytes, target_rows=512):
    """Largest divisor of B giving ~target_rows MXU rows/step within the VMEM budget,
    while keeping >= 2 grid steps so the parallel batch axis splits across TensorCores."""
    divisors = [d for d in range(1, B + 1) if B % d == 0]
    best = 1
    for d in divisors:
        rows_ok = d * T <= max(T, target_rows)
        fits = _vmem_bytes_est(d, T, D, H, x_dtype, w_dtype, out_dtype) <= vmem_budget_bytes
        if rows_ok and fits:
            best = d
    if best == B and B >= 2:
        # Keep grid >= 2 (v7x megacore); costs only ~0.35us/step on 1-TC chips.
        best = max(d for d in divisors if d < B)
    return best


def attention_pooler(x, w1, b1, w2, b2, *, batch_block=None):
    """x: (B, T, D); w1: (D, D); b1: (D,); w2: (D, H); b2: (H,).
    Returns (pooled (B, H*D), attn (B, H, T))."""
    B, T, D = x.shape
    H = w2.shape[1]

    cap = _vmem_capacity_bytes()
    budget = int(0.8 * cap)

    if batch_block is None:
        batch_block = _pick_batch_block(B, T, D, H, x.dtype, w1.dtype, x.dtype, budget)
    assert B % batch_block == 0
    bblk = batch_block

    est = _vmem_bytes_est(bblk, T, D, H, x.dtype, w1.dtype, x.dtype)
    vmem_limit = int(min(0.9 * cap, max(32 * 1024 * 1024, 1.5 * est)))

    w2t = jnp.transpose(w2)          # (H, D): scores built directly in (H over D) form
    b1_2d = b1.reshape(1, D)
    b2_2d = b2.reshape(H, 1)

    grid = (B // bblk,)

    pooled, attn = pl.pallas_call(
        _attention_pooler_kernel,
        out_shape=(
            jax.ShapeDtypeStruct((B, H, D), x.dtype),
            jax.ShapeDtypeStruct((B, H, T), x.dtype),
        ),
        grid_spec=pltpu.PrefetchScalarGridSpec(
            num_scalar_prefetch=0,
            grid=grid,
            in_specs=[
                pl.BlockSpec((bblk, T, D), lambda i: (i, 0, 0)),   # x
                pl.BlockSpec((D, D), lambda i: (0, 0)),            # W1
                pl.BlockSpec((1, D), lambda i: (0, 0)),            # b1
                pl.BlockSpec((H, D), lambda i: (0, 0)),            # W2^T
                pl.BlockSpec((H, 1), lambda i: (0, 0)),            # b2
            ],
            out_specs=[
                pl.BlockSpec((bblk, H, D), lambda i: (i, 0, 0)),   # pooled
                pl.BlockSpec((bblk, H, T), lambda i: (i, 0, 0)),   # attn
            ],
        ),
        compiler_params=pltpu.CompilerParams(
            dimension_semantics=("parallel",),
            vmem_limit_bytes=vmem_limit),
    )(x, w1, b1_2d, w2t, b2_2d)

    return pooled.reshape(B, H * D), attn


def attention_pooler_ref(x, w1, b1, w2, b2):
    """Pure-JAX reference mirroring the PyTorch forward."""
    h = jnp.tanh(x @ w1 + b1)                 # (B, T, D)
    scores = h @ w2 + b2                      # (B, T, H)
    attn = jnp.transpose(scores, (0, 2, 1))   # (B, H, T)
    attn = jax.nn.softmax(attn, axis=-1)
    pooled = jnp.einsum('bht,btd->bhd', attn, x)
    return pooled.reshape(x.shape[0], -1), attn


def _run_case(key, B, T, D, H, atol, rtol):
    kx, k1, k2, k3, k4 = jax.random.split(key, 5)
    x = jax.random.normal(kx, (B, T, D), dtype=jnp.float32)
    w1 = jax.random.normal(k1, (D, D), dtype=jnp.float32) * 0.1
    b1 = jax.random.normal(k2, (D,), dtype=jnp.float32) * 0.1
    w2 = jax.random.normal(k3, (D, H), dtype=jnp.float32) * 0.1
    b2 = jax.random.normal(k4, (H,), dtype=jnp.float32) * 0.1

    pooled, attn = attention_pooler(x, w1, b1, w2, b2)
    jax.block_until_ready((pooled, attn))

    pooled_ref, attn_ref = attention_pooler_ref(x, w1, b1, w2, b2)
    assert pooled.shape == (B, H * D)
    assert attn.shape == (B, H, T)
    assert jnp.allclose(pooled, pooled_ref, atol=atol, rtol=rtol)
    assert jnp.allclose(attn, attn_ref, atol=atol, rtol=rtol)


if __name__ == "__main__":
    key = jax.random.PRNGKey(0)
    k_small, k_big = jax.random.split(key, 2)

    # Small shapes matching the module spec (batch=2, seq=8, dim=32, heads=2).
    _run_case(k_small, B=2, T=8, D=32, H=2, atol=1e-5, rtol=1e-5)

    # Slightly larger case that exercises batch-blocking (grid > 1 step, bblk > 1).
    _run_case(k_big, B=8, T=64, D=128, H=4, atol=1e-4, rtol=1e-4)

    print("KERNEL_OK")
</pallas_src>

<mosaic_0001>
module attributes {stable_mosaic.version = 11 : i64} {
  func.func @_attention_pooler_kernel(%arg0: i32, %arg1: memref<1x8x32xf32, #tpu.memory_space<vmem>>, %arg2: memref<32x32xf32, #tpu.memory_space<vmem>>, %arg3: memref<1x32xf32, #tpu.memory_space<vmem>>, %arg4: memref<2x32xf32, #tpu.memory_space<vmem>>, %arg5: memref<2x1xf32, #tpu.memory_space<vmem>>, %arg6: memref<1x2x32xf32, #tpu.memory_space<vmem>>, %arg7: memref<1x2x8xf32, #tpu.memory_space<vmem>>) attributes {dimension_semantics = [#tpu.dimension_semantics<parallel>], iteration_bounds = array<i64: 2>, scalar_prefetch = 0 : i64, scratch_operands = 0 : i64, tpu.core_type = #tpu.core_type<tc>, window_params = [{transform_indices = @transform_0, window_bounds = array<i64: 1, 8, 32>}, {pipeline_mode = #tpu.pipeline_mode<synchronous>, transform_indices = @transform_1, window_bounds = array<i64: 32, 32>}, {pipeline_mode = #tpu.pipeline_mode<synchronous>, transform_indices = @transform_2, window_bounds = array<i64: 1, 32>}, {pipeline_mode = #tpu.pipeline_mode<synchronous>, transform_indices = @transform_3, window_bounds = array<i64: 2, 32>}, {pipeline_mode = #tpu.pipeline_mode<synchronous>, transform_indices = @transform_4, window_bounds = array<i64: 2, 1>}, {transform_indices = @transform_5, window_bounds = array<i64: 1, 2, 32>}, {transform_indices = @transform_6, window_bounds = array<i64: 1, 2, 8>}]} {
    %c0 = arith.constant 0 : index
    %c0_0 = arith.constant 0 : index
    %c0_1 = arith.constant 0 : index
    %0 = vector.load %arg1[%c0, %c0_0, %c0_1] : memref<1x8x32xf32, #tpu.memory_space<vmem>>, vector<1x8x32xf32>
    %1 = vector.shape_cast %0 : vector<1x8x32xf32> to vector<8x32xf32>
    %c0_2 = arith.constant 0 : index
    %c0_3 = arith.constant 0 : index
    %2 = vector.load %arg2[%c0_2, %c0_3] : memref<32x32xf32, #tpu.memory_space<vmem>>, vector<32x32xf32>
    %cst = arith.constant dense<0.000000e+00> : vector<8x32xf32>
    %3 = tpu.matmul %1, %2, %cst {dimension_numbers = #tpu.dot_dimension_numbers<[1], [0], [0], [1], [0, 0, 1, 1], [], []>} : vector<8x32xf32>, vector<32x32xf32>, vector<8x32xf32> -> vector<8x32xf32>
    %c0_4 = arith.constant 0 : index
    %c0_5 = arith.constant 0 : index
    %4 = vector.load %arg3[%c0_4, %c0_5] : memref<1x32xf32, #tpu.memory_space<vmem>>, vector<1x32xf32>
    %5 = vector.broadcast %4 : vector<1x32xf32> to vector<8x32xf32>
    %6 = arith.addf %3, %5 : vector<8x32xf32>
    %7 = math.tanh %6 : vector<8x32xf32>
    %8 = vector.shape_cast %7 : vector<8x32xf32> to vector<1x8x32xf32>
    %c0_6 = arith.constant 0 : index
    %c0_7 = arith.constant 0 : index
    %9 = vector.load %arg4[%c0_6, %c0_7] : memref<2x32xf32, #tpu.memory_space<vmem>>, vector<2x32xf32>
    %10 = vector.shape_cast %9 : vector<2x32xf32> to vector<1x2x32xf32>
    %cst_8 = arith.constant dense<0.000000e+00> : vector<1x2x8xf32>
    %11 = tpu.matmul %10, %8, %cst_8 {dimension_numbers = #tpu.dot_dimension_numbers<[2], [2], [1], [1], [0, 0, 0, 1, 1, 1], [0], [0]>} : vector<1x2x32xf32>, vector<1x8x32xf32>, vector<1x2x8xf32> -> vector<1x2x8xf32>
    %c0_9 = arith.constant 0 : index
    %c0_10 = arith.constant 0 : index
    %12 = vector.load %arg5[%c0_9, %c0_10] : memref<2x1xf32, #tpu.memory_space<vmem>>, vector<2x1xf32>
    %13 = vector.shape_cast %12 : vector<2x1xf32> to vector<1x2x1xf32>
    %14 = vector.broadcast %13 : vector<1x2x1xf32> to vector<1x2x8xf32>
    %15 = arith.addf %11, %14 : vector<1x2x8xf32>
    %cst_11 = arith.constant dense<0xFF800000> : vector<1x2xf32>
    %16 = vector.multi_reduction <maximumf>, %15, %cst_11 [2] : vector<1x2x8xf32> to vector<1x2xf32>
    %17 = vector.shape_cast %16 : vector<1x2xf32> to vector<1x2x1xf32>
    %18 = vector.broadcast %17 : vector<1x2x1xf32> to vector<1x2x8xf32>
    %19 = arith.subf %15, %18 : vector<1x2x8xf32>
    %20 = math.exp %19 : vector<1x2x8xf32>
    %cst_12 = arith.constant dense<0.000000e+00> : vector<1x2xf32>
    %21 = vector.multi_reduction <add>, %20, %cst_12 [2] : vector<1x2x8xf32> to vector<1x2xf32>
    %22 = vector.shape_cast %21 : vector<1x2xf32> to vector<1x2x1xf32>
    %23 = tpu.reciprocal %22 {approx = true} : vector<1x2x1xf32> -> vector<1x2x1xf32>
    %24 = arith.mulf %22, %23 : vector<1x2x1xf32>
    %cst_13 = arith.constant 2.000000e+00 : f32
    %25 = vector.broadcast %cst_13 : f32 to vector<1x2x1xf32>
    %26 = arith.subf %25, %24 : vector<1x2x1xf32>
    %27 = arith.mulf %23, %26 : vector<1x2x1xf32>
    %28 = vector.broadcast %27 : vector<1x2x1xf32> to vector<1x2x8xf32>
    %29 = arith.mulf %20, %28 : vector<1x2x8xf32>
    %c0_14 = arith.constant 0 : index
    %c0_15 = arith.constant 0 : index
    %c0_16 = arith.constant 0 : index
    %30 = vector.load %arg7[%c0_14, %c0_15, %c0_16] : memref<1x2x8xf32, #tpu.memory_space<vmem>>, vector<1x2x8xf32>
    tpu.vector_store %arg7[%c0_14, %c0_15, %c0_16], %29 {strides = array<i32>} : memref<1x2x8xf32, #tpu.memory_space<vmem>>, vector<1x2x8xf32>,
    %cst_17 = arith.constant dense<0.000000e+00> : vector<1x2x32xf32>
    %31 = tpu.matmul %29, %0, %cst_17 {dimension_numbers = #tpu.dot_dimension_numbers<[2], [1], [1], [2], [0, 0, 0, 1, 1, 2], [0], [0]>} : vector<1x2x8xf32>, vector<1x8x32xf32>, vector<1x2x32xf32> -> vector<1x2x32xf32>
    %c0_18 = arith.constant 0 : index
    %c0_19 = arith.constant 0 : index
    %c0_20 = arith.constant 0 : index
    %32 = vector.load %arg6[%c0_18, %c0_19, %c0_20] : memref<1x2x32xf32, #tpu.memory_space<vmem>>, vector<1x2x32xf32>
    tpu.vector_store %arg6[%c0_18, %c0_19, %c0_20], %31 {strides = array<i32>} : memref<1x2x32xf32, #tpu.memory_space<vmem>>, vector<1x2x32xf32>,
    return
  }
  func.func @transform_0(%arg0: i32) -> (i32, i32, i32) {
    %c0_i32 = arith.constant 0 : i32
    %c0_i32_0 = arith.constant 0 : i32
    %c0_i32_1 = arith.constant 0 : i32
    return %arg0, %c0_i32, %c0_i32_0 : i32, i32, i32
  }
  func.func @transform_1(%arg0: i32) -> (i32, i32) {
    %c0_i32 = arith.constant 0 : i32
    %c0_i32_0 = arith.constant 0 : i32
    %c0_i32_1 = arith.constant 0 : i32
    return %c0_i32, %c0_i32_0 : i32, i32
  }
  func.func @transform_2(%arg0: i32) -> (i32, i32) {
    %c0_i32 = arith.constant 0 : i32
    %c0_i32_0 = arith.constant 0 : i32
    %c0_i32_1 = arith.constant 0 : i32
    return %c0_i32, %c0_i32_0 : i32, i32
  }
  func.func @transform_3(%arg0: i32) -> (i32, i32) {
    %c0_i32 = arith.constant 0 : i32
    %c0_i32_0 = arith.constant 0 : i32
    %c0_i32_1 = arith.constant 0 : i32
    return %c0_i32, %c0_i32_0 : i32, i32
  }
  func.func @transform_4(%arg0: i32) -> (i32, i32) {
    %c0_i32 = arith.constant 0 : i32
    %c0_i32_0 = arith.constant 0 : i32
    %c0_i32_1 = arith.constant 0 : i32
    return %c0_i32, %c0_i32_0 : i32, i32
  }
  func.func @transform_5(%arg0: i32) -> (i32, i32, i32) {
    %c0_i32 = arith.constant 0 : i32
    %c0_i32_0 = arith.constant 0 : i32
    %c0_i32_1 = arith.constant 0 : i32
    return %arg0, %c0_i32, %c0_i32_0 : i32, i32, i32
  }
  func.func @transform_6(%arg0: i32) -> (i32, i32, i32) {
    %c0_i32 = arith.constant 0 : i32
    %c0_i32_0 = arith.constant 0 : i32
    %c0_i32_1 = arith.constant 0 : i32
    return %arg0, %c0_i32, %c0_i32_0 : i32, i32, i32
  }
}

</mosaic_0001>

<bundles_post_ra>
// kernel: tpu_custom_call.1
= control target key start
LH: loop header
LB: loop body
LE: loop exit
PB: predicated region body
PF: predicated region fallthrough
CT: control target
= control target key end

     0   :  { %s1014_s0 = inlined_call_operand.hbm [shape: f32[2,8,32], index: 0, kind: input, shape index: {}]   ;;  %s1015_s1 = inlined_call_operand.hbm [shape: f32[32,32], index: 1, kind: input, shape index: {}]   ;;  %s1016_s2 = inlined_call_operand.vmem [shape: f32[1,32], index: 2, kind: input, shape index: {}]   ;;  %s1017_s3 = inlined_call_operand.vmem [shape: f32[2,32], index: 3, kind: input, shape index: {}]   ;;  %s1018_s4 = inlined_call_operand.vmem [shape: f32[2,1], index: 4, kind: input, shape index: {}]   ;;  %s1019_s5 = inlined_call_operand.hbm [shape: f32[2,2,32], index: 5, kind: output, shape index: {0}]   ;;  %s1020_s6 = inlined_call_operand.hbm [shape: f32[2,2,8], index: 6, kind: output, shape index: {1}]  }
   0x1   :  { %1021 = sst [smem:[#allocation14_spill]] %s1014_s0 }
   0x2   :  { %12 = vsyncpa [#allocation3], 0 }
   0x3   :  { %14 = vsyncpa [#allocation3 + $0x1], 0 }
   0x4   :  { %15 = vsyncpa [#allocation6], 0 }
   0x5   :  { %16 = vsyncpa [#allocation4], 0 }
   0x6   :  { %18 = vsyncpa [#allocation4 + $0x1], 0 }
   0x7   :  { %19 = vsyncpa [#allocation9], 0 }
   0x8   :  { %21 = vsyncpa [#allocation9 + $0x1], 0  ;;  %s851_s21 = smov 0   ;;  %s853_s22 = smov 0  }
   0x9   :  { %s855_s23 = smov 0   ;;  %s857_s24 = smov 0  }
   0xa LB: > { %s205_s27 = sshll.u32 %s1015_s1, 4  ;;  %s875_s28 = sadd.s32 4294967295, %s810_s24   ;;  %s810_s24 = sphi %s857_s24, %s1032_s24   ;;  %s806_s23 = sphi %s855_s23, %s1031_s23   ;;  %s802_s22 = sphi %s853_s22, %s1030_s22   ;;  %s798_s21 = sphi %s851_s21, %s1029_s21   ;;  %s206_s27 = int_to_ptr.hbm [resolvable:$true] %s205_s27 }
   0xb   : > { %p555_p0 = scmp.ge.s32.totalorder %s810_s24, 1  ;;  %p48_p1 = scmp.eq.s32.totalorder %s875_s28, 0 }
   0xc   : > { %p194_p2 = scmp.lt.s32.totalorder %s810_s24, 3  ;;  %s812_s30 = smov [#allocation5]  }
   0xd   : > { %s207_s7 = sshll.u32 %s812_s30, 4  ;;  %s813_s8 = smov 128   ;;  %s208_s7 = int_to_ptr.vmem [resolvable:$true] %s207_s7 }
   0xe   : > { %p880_p3 = pnand %p555_p0, %p194_p2  ;;  %s814_s9 = smov 8  }
   0xf   : > { %s554_s10 = sadd.s32 4294967294, %s810_s24   ;;  %s891_s11 = sadd.s32 1, %s810_s24  }
  0x10   : > { %p585_p4 = pneg %p880_p3  ;;  %s34_s12 = sadd.s32 1, %s806_s23 }
  0x11   : > { %s31_s13 = ssub.s32 %s810_s24, %s891_s11  ;;  %p41_p7 = scmp.ne.s32.totalorder %s806_s23, %s802_s22 }
  0x12   : > { %p586_p6 = pnand %p585_p4, %p48_p1  ;;  %p32_p8 = scmp.eq.s32.totalorder %s31_s13, 0 }
  0x13   : > { %p42_p9 = scmp.eq.s32.totalorder %s810_s24, 0  ;;  %p47_p10 = scmp.ne.s32.totalorder %s802_s22, %s798_s21 }
  0x14   : > { %588 = dma.hbm_to_vmem [thread:$0]  (!%p586_p6), %s206_s27, 512, %s208_s7, [#allocation6], %s813_s8, %s813_s8, %s814_s9  }
  0x15   : > { %p155_p11 = scmp.eq.s32.totalorder %s875_s28, 1  ;;  %p907_p12 = por %p48_p1, %p47_p10 }
  0x16   : > { %s903_s14 = scalar_select %p32_p8, %s806_s23, %s34_s12  }
  0x17   : > { %p911_p13 = por %p155_p11, %p41_p7  ;;  %p161_p0 = scmp.eq.s32.totalorder %s554_s10, 1 }
  0x18   : > { %p43_p2 = por %p42_p9, %p41_p7  ;;  %s230_s17 = sand.u32 1, %s806_s23  }
  0x19   : > { %p916_p4 = por %p161_p0, %p47_p10  ;;  %p601_p6 = scmp.lt.s32.totalorder %s810_s24, 2 }
  0x1a   : > { %s558_s19 = sshll.u32 %s230_s17, 3  ;;  %s559_s20 = sshll.u32 %s810_s24, 3 }
  0x1b   : > { %s1026_s0 = sld [smem:[#allocation14_spill]]  ;;  %s234_s7 = scalar_lea.vmem [#allocation2], %s558_s19 }
  0x1c   : > { %s242_s8 = sshll.u32 %s234_s7, 4  ;;  %p925_p8 = pnand %p601_p6, %p43_p2  ;;  %s243_s8 = int_to_ptr.vmem [resolvable:$true] %s242_s8 }
  0x1d   : > { %s231_s10 = scalar_lea.sflag [#allocation3], %s230_s17 }
  0x1e   : > { %p682_p9 = pneg %p925_p8 }
  0x21   : > { %s238_s27 = scalar_lea.hbm %s1026_s0, %s559_s20  ;;  %s685_s19 = scalar_lea.hbm %s1026_s0, 16 }
  0x22   : > { %s240_s30 = sshll.u32 %s238_s27, 4  ;;  %s241_s30 = int_to_ptr.hbm [resolvable:$true] %s240_s30 }
  0x23   : > { %s678_s12 = sshra.s32 %s241_s30, 4  ;;  %s679_s12 = int_to_ptr.hbm [resolvable:$true] %s678_s12 }
  0x24   : > { %s680_s13 = scalar_lea.hbm %s679_s12, 8  ;;  %p686_p0 = scmp.lt.s32.totalorder %s679_s12, %s1026_s0 }
  0x25   : > { %p681_p7 = scmp.ne.s32.totalorder %s679_s12, %s680_s13  ;;  %p687_p2 = scmp.lt.s32.totalorder %s685_s19, %s680_s13 }
  0x27   : > { %p683_p10 = pnand %p682_p9, %p681_p7  ;;  %p688_p6 = por %p687_p2, %p686_p0 }
  0x29   : > { %p684_p11 = pneg %p683_p10 }
  0x2b   : > { %p689_p5 = pnand %p688_p6, %p684_p11 }
  0x2d   : > { %692 = shalt.err (!%p689_p5)
}
  0x2e   : > { %592 = dma.hbm_to_vmem [thread:$0]  (!%p925_p8), %s241_s30, 128, %s243_s8, %s231_s10  }
  0x2f   : > { %251 = sbr.rel (%p880_p3) target bundleno = 724 (0x2d4), region = 40  ;;  %s942_s17 = sand.u32 (!%p880_p3), 1, %s802_s22  }
  0x30   : > { %s561_s7 = sshll.u32 (!%p880_p3), %s942_s17, 3  ;;  %s254_s20 = scalar_lea.sflag (!%p880_p3), [#allocation3], %s942_s17 }
  0x31   : > { %s257_s25 = scalar_lea.vmem (!%p880_p3), [#allocation2], %s561_s7 }
  0x34   : > { %781 = dma.done.wait (%p907_p12), %s254_s20, 128  }
  0x35   : > { %783 = vsyncadd (%p907_p12), %s254_s20, 4294967168 }
  0x36   : > { %785 = dma.done.wait (%p48_p1), [#allocation6], 512  }
  0x37   : > { %787 = vsyncadd (%p48_p1), [#allocation6], 4294966784  ;;  %v301_v0 = vld [vmem:[#allocation5 + $0x18] sm:$0xff]  ;;  %v300_v1 = vld [vmem:[#allocation5 + $0x10] sm:$0xff]  ;;  %vm306_vm0 = vcmask 261120   ;;  %v815_v6 = vmov 0  }
  0x38   : > { %322 = vmatpush.msra.mxu0 %v301_v0  ;;  %v297_v2 = vld [vmem:[%s257_s25] sm:$0xff]  ;;  %v299_v3 = vld [vmem:[#allocation5 + $0x8] sm:$0xff]  ;;  %v298_v4 = vld [vmem:[#allocation5] sm:$0xff]  ;;  %640 = vset.pattern.permute.xlu0 %v815_v6  ;;  %vm364_vm1 = vcmask 58368   ;;  %s563_s12 = sshll.u32 %s942_s17, 1  ;;  %vm380_vm2 = vcmask 64512  }
  0x39   : > { %399 = vmatpush.msra.mxu2 %v297_v2  ;;  %v332_v5 = vld [vmem:[%s1018_s4] sm:$0x3]  ;;  %s296_s13 = scalar_lea.vmem [#allocation8], %s563_s12  ;;  %s571_s19 = sshll.u32 %s875_s28, 1 }
  0x3a   : > { %323 = vmatpush.msra.mxu0 %v300_v1  ;;  %335 = vperm.xlu0 %640, %v332_v5   ;;  %v641_v7 = vld [vmem:[%s1016_s2] ss:$0 sm:$0xff]  ;;  %s436_s7 = scalar_lea.hbm %s1020_s6, %s571_s19  ;;  %s438_s20 = sshll.u32 %s296_s13, 4  ;;  %s439_s20 = int_to_ptr.vmem [resolvable:$true] %s438_s20 }
  0x3b   : > { %v331_v11 = vld [vmem:[%s1017_s3] sm:$0x3]  ;;  %s440_s25 = sshll.u32 %s436_s7, 4  ;;  %s412_s29 = scalar_lea.sflag [#allocation9], %s942_s17  ;;  %s441_s25 = int_to_ptr.hbm [resolvable:$true] %s440_s25 }
  0x3c   : > { %324 = vmatpush.msra.mxu0 %v299_v3  ;;  %s722_s15 = sshra.s32 %s441_s25, 4  ;;  %s728_s28 = scalar_lea.hbm %s1020_s6, 4  ;;  %s723_s15 = int_to_ptr.hbm [resolvable:$true] %s722_s15 }
  0x3d   : > { %s724_s30 = scalar_lea.hbm %s723_s15, 2  ;;  %p729_p12 = scmp.lt.s32.totalorder %s723_s15, %s1020_s6 }
  0x3e   : > { %325 = vmatpush.msra.mxu0 %v298_v4  ;;  %p725_p1 = scmp.ne.s32.totalorder %s723_s15, %s724_s30  ;;  %p730_p8 = scmp.lt.s32.totalorder %s728_s28, %s724_s30 }
  0x3f   : > { %565 = vmatmul.msk.f32.vlgmr.msra.gmra.mxu0 %vm306_vm0, %v297_v2 }
  0x40   : > { %p726_p3 = pnand %p725_p1, %p911_p13  ;;  %p731_p7 = por %p730_p8, %p729_p12 }
  0x42   : > { %p727_p5 = pneg %p726_p3 }
  0x44   : > { %p732_p9 = pnand %p731_p7, %p727_p5 }
  0xac   : > { %v336_v12 = vpop.permute.xlu0 %335 }
  0xbc   : > { %v327_v8 = vpop.f32.mrf.mxu0 }
  0xbd   : > { %v328_v9 = vadd.f32 %v641_v7, %v327_v8 }
  0xbf   : > { %642 = vtanh.f32 %v328_v9 }
  0xc5   : > { %v643_v10 = vpop.eup %642 }
  0xc6   : > { %566 = vmatpush.xpose.msk.msra.mxu1 %vm306_vm0, %v643_v10 }
  0xc9   : > { %567 = vmatmul.msk.f32.vlgmr.msra.gmra.mxu1 %vm306_vm0, %v331_v11 }
 0x146   : > { %v361_v13 = vpop.f32.mrf.mxu1 }
 0x147   : > { %v362_v14 = vadd.f32 %v361_v13, %v336_v12 }
 0x149   : > { %v365_v15 = vsel %vm364_vm1, %v362_v14, -inf }
 0x14a   : > { %366 = vmax.xlane.f32.xlu0 %v365_v15 }
 0x1bd   : > { %v367_v16 = vpop.xlane.xlu0 %366 }
 0x1be   : > { %v368_v17 = vsub.f32 %v362_v14, %v367_v16 }
 0x1c0   : > { %v369_v18 = vmul.f32 1.442695, %v368_v17 }
 0x1c2   : > { %644 = vpow2.f32 %v369_v18 }
 0x1c8   : > { %v645_v19 = vpop.eup %644 }
 0x1c9   : > { %v371_v20 = vsel %vm364_vm1, %v645_v19, 0.0 }
 0x1ca   : > { %372 = vadd.xlane.f32.xlu1 %v371_v20 }
 0x23d   : > { %v373_v21 = vpop.xlane.xlu1 %372 }
 0x23e   : > { %646 = vrcp.f32 %v373_v21 }
 0x244   : > { %v647_v22 = vpop.eup %646 }
 0x245   : > { %v375_v23 = vmul.f32 %v647_v22, %v373_v21 }
 0x247   : > { %v376_v24 = vsub.f32 2.0, %v375_v23 }
 0x249   : > { %v377_v25 = vmul.f32 %v647_v22, %v376_v24 }
 0x24b   : > { %v378_v26 = vmul.f32 %v645_v19, %v377_v25 }
 0x24d   : > { %568 = vmatmul.msk.f32.vlgmr.msra.gmra.mxu2 %vm380_vm2, %v378_v26  ;;  %379 = vst.msk [vmem:[%s296_s13] sm:$0x3] %vm364_vm1, %v378_v26 }
 0x24e   : > { %735 = shalt.err (!%p732_p9)
}
 0x24f   : > { %582 = dma.vmem_to_hbm [thread:$0]  (%p911_p13), %s439_s20, 32, %s441_s25, %s412_s29   ;;  %vm404_vm3 = vcmask 254976  }
 0x250   : > { %s422_s27 = scalar_lea.hbm %s1019_s5, %s571_s19  ;;  %s289_s7 = scalar_lea.vmem [#allocation7], %s563_s12 }
 0x251   : > { %s424_s8 = sshll.u32 %s289_s7, 4  ;;  %s426_s9 = sshll.u32 %s422_s27, 4  ;;  %s425_s8 = int_to_ptr.vmem [resolvable:$true] %s424_s8  ;;  %s427_s9 = int_to_ptr.hbm [resolvable:$true] %s426_s9 }
 0x252   : > { %s407_s0 = scalar_lea.sflag [#allocation4], %s942_s17  ;;  %s750_s15 = sshra.s32 %s427_s9, 4  ;;  %s751_s15 = int_to_ptr.hbm [resolvable:$true] %s750_s15 }
 0x253   : > { %s752_s30 = scalar_lea.hbm %s751_s15, 2  ;;  %s756_s19 = scalar_lea.hbm %s1019_s5, 4 }
 0x254   : > { %p753_p10 = scmp.ne.s32.totalorder %s751_s15, %s752_s30  ;;  %p757_p2 = scmp.lt.s32.totalorder %s751_s15, %s1019_s5 }
 0x255   : > { %p758_p6 = scmp.lt.s32.totalorder %s756_s19, %s752_s30 }
 0x256   : > { %p754_p11 = pnand %p753_p10, %p911_p13 }
 0x257   : > { %p759_p1 = por %p758_p6, %p757_p2 }
 0x258   : > { %p755_p0 = pneg %p754_p11 }
 0x25a   : > { %p760_p3 = pnand %p759_p1, %p755_p0 }
 0x2d0   : > { %v401_v27 = vpop.f32.mrf.mxu2 }
 0x2d1   : > { %405 = vst.msk [vmem:[%s289_s7] sm:$0x3] %vm404_vm3, %v401_v27 }
 0x2d2   : > { %763 = shalt.err (!%p760_p3)
}
 0x2d3   : > { %581 = dma.vmem_to_hbm [thread:$0]  (%p911_p13), %s425_s8, 32, %s427_s9, %s407_s0  }
 0x2d4 PF: > { %s452_s17 = sand.u32 1, %s798_s21   ;;  %p1028_p5 = scmp.ge.s32.totalorder %s810_s24, 2 }
 0x2d5   : > { %s453_s28 = scalar_lea.sflag [#allocation4], %s452_s17 }
 0x2d6   : > { %p594_p12 = pnand %p1028_p5, %p916_p4 }
 0x2d8   : > { %p595_p8 = pneg %p594_p12 }
 0x2da   : > { %789 = dma.done.wait (%p595_p8), %s453_s28, 32  }
 0x2db   : > { %791 = vsyncadd (%p595_p8), %s453_s28, 4294967264  ;;  %s463_s10 = scalar_lea.sflag [#allocation9], %s452_s17 }
 0x2dc   : > { %793 = dma.done.wait (%p595_p8), %s463_s10, 32  }
 0x2dd   : > { %795 = vsyncadd (%p595_p8), %s463_s10, 4294967264  ;;  %p24_p13 = scmp.ge.s32.totalorder %s891_s11, 4   ;;  %s1029_s21 = smov %s802_s22 }
 0x2de   : > { %s1030_s22 = smov %s806_s23  ;;  %s1031_s23 = smov %s903_s14 }
 0x2df   : > { %s1032_s24 = smov %s891_s11  ;;  %26 = sbr.rel (!%p24_p13) target bundleno = 10 (0xa), region = 106 }
 0x2e4   :  { %469 = vsyncpa [#allocation3], 1 }
 0x2e5   :  { %471 = vsyncpa [#allocation3 + $0x1], 1 }
 0x2e6   :  { %472 = vsyncpa [#allocation6], 1 }
 0x2e7   :  { %473 = vsyncpa [#allocation4], 1 }
 0x2e8   :  { %475 = vsyncpa [#allocation4 + $0x1], 1 }
 0x2e9   :  { %476 = vsyncpa [#allocation9], 1 }
 0x2ea   :  { %478 = vsyncpa [#allocation9 + $0x1], 1 }

</bundles_post_ra>
